<compile_context>
chip_gen: v7x
topology: tpu7x:2x2x1
jax: 0.10.0
libtpu: 0.0.40
codegen_flags: <defaults>
</compile_context>

<pallas_src>
import functools

import jax
import jax.numpy as jnp
import numpy as np
from jax import lax
from jax.experimental import pallas as pl
from jax.experimental.pallas import tpu as pltpu


def _supcon_kernel(f1_ref, f2_hbm, mem_ref, lab_ref, loss_ref, f2_buf, dma_sem, *,
                   temperature, base_temperature, sampled_frame_idx,
                   memory_is_normalized):
    """SupCon loss with memory bank, single VMEM block.

    f1_ref  : [B, D]       feature1, f32, VMEM
    f2_hbm  : [B, F, D]    feature2, f32, HBM (pl.ANY) -- only one frame is DMA'd
    mem_ref : [M, D]       sampled memory-bank rows, f32, VMEM
    lab_ref : [1, 2B]      effective labels per *concatenated* anchor row, int32
    loss_ref: [1, 1]       scalar output, SMEM
    f2_buf  : [B, 1, D]    VMEM scratch for the sampled frame
    dma_sem : DMA semaphore
    """
    b_rows = f1_ref.shape[0]
    a_rows = 2 * b_rows

    # Kick off the strided HBM->VMEM DMA of the sampled frame; overlap it with
    # the feature1 normalization and mask construction below.
    frame_cp = pltpu.make_async_copy(
        f2_hbm.at[:, pl.ds(sampled_frame_idx, 1), :], f2_buf, dma_sem)
    frame_cp.start()

    # F.normalize(p=2, dim=1): x / max(||x||, 1e-12) == x * min(rsqrt(||x||^2), 1e12)
    # rsqrt runs on the EUP slot; no VALU sqrt/divide chain.
    f1 = f1_ref[...]
    f1_n = f1 * jnp.minimum(lax.rsqrt(jnp.sum(f1 * f1, axis=1, keepdims=True)),
                            jnp.float32(1e12))

    m = mem_ref[...]
    if memory_is_normalized:
        # Bank rows are already unit-norm (or all-zero, for which the rsqrt+min
        # path is an identity anyway): skip the [M, D] re-normalization.
        m_n = m
    else:
        m_n = m * jnp.minimum(lax.rsqrt(jnp.sum(m * m, axis=1, keepdims=True)),
                              jnp.float32(1e12))

    # Positive mask from the single lane-oriented label vector; the column
    # orientation is a small in-kernel transpose.  The memory-bank columns of
    # the reference mask are all zero, so only the [A, A] block is ever needed.
    lab_row = lab_ref[...]                                   # [1, A] int32
    lab_col = jnp.transpose(lab_row)                         # [A, 1]
    mask = (lab_col == lab_row).astype(jnp.float32)          # [A, A]

    frame_cp.wait()
    f2 = f2_buf[:, 0, :]
    f2_n = f2 * jnp.minimum(lax.rsqrt(jnp.sum(f2 * f2, axis=1, keepdims=True)),
                            jnp.float32(1e12))

    # Anchors in concatenated order [f1_n; f2_n] (the label permutation done in
    # the wrapper accounts for the torch interleave-vs-tile mismatch).
    f_all = jnp.concatenate([f1_n, f2_n], axis=0)            # [A, D]

    # Fold 1/temperature into the anchor operand instead of dividing [A, C].
    if temperature == 1.0:
        f_s = f_all
    else:
        f_s = f_all * jnp.float32(1.0 / temperature)

    # anchor_dot_contrast split into anchor-vs-anchor / anchor-vs-memory blocks
    # so the anchor rows are never duplicated in VMEM.
    s_aa = lax.dot_general(f_s, f_all, (((1,), (1,)), ((), ())),
                           preferred_element_type=jnp.float32)   # [A, A]
    s_am = lax.dot_general(f_s, m_n, (((1,), (1,)), ((), ())),
                           preferred_element_type=jnp.float32)   # [A, M]

    # Numerically stable log-softmax over the (split) contrast axis, matching
    # torch: max -> subtract -> exp -> clamp(min=1e-12) -> sum -> log.
    row_max = jnp.maximum(jnp.max(s_aa, axis=1, keepdims=True),
                          jnp.max(s_am, axis=1, keepdims=True))
    e_aa = jnp.maximum(jnp.exp(s_aa - row_max), 1e-12)
    e_am = jnp.maximum(jnp.exp(s_am - row_max), 1e-12)
    log_denom = jnp.log(jnp.sum(e_aa, axis=1, keepdims=True) +
                        jnp.sum(e_am, axis=1, keepdims=True))

    log_prob_aa = (s_aa - row_max) - log_denom
    pos_pairs = jnp.maximum(jnp.sum(mask, axis=1, keepdims=True), 1.0)
    # Exact divide (perf review): the approx EUP reciprocal only added bias here.
    mean_log_prob_pos = (jnp.sum(mask * log_prob_aa, axis=1, keepdims=True)
                         / pos_pairs)                          # [A, 1]

    # loss = mean(-(T/base_T) * mean_log_prob_pos)
    scale = -(temperature / base_temperature) / a_rows
    loss_ref[0, 0] = jnp.sum(mean_log_prob_pos) * scale


def supcon_loss_with_memory_bank(feature1, feature2, labels, memory_features, *,
                                 temperature=1.0, base_temperature=1.0,
                                 sampled_frame_idx=0, memory_is_normalized=True):
    """JAX glue reproducing SupConLossWithMemoryBank.forward.

    feature1        : [B, L]
    feature2        : [B, num_frame, L]
    labels          : [B] (int)
    memory_features : [B, L]  rows sampled from the memory bank
    """
    B, L = feature1.shape
    A = 2 * B

    # TODO(synk): torch uses random.randint for the frame and random.sample for
    # the bank rows; both are deterministic parameters here.

    # Effective label of each *concatenated* anchor row (f1 rows then f2 rows).
    # The torch reference interleaves the feature rows but tiles the labels
    # (concatenated order); concatenated row c corresponds to interleaved row
    # i(c) = 2*(c % B) + c // B, whose reference label is labels[i(c) % B].
    # This static [2B] remap reproduces that mismatch bit-for-bit while letting
    # the kernel skip the interleaving stack+reshape entirely.
    c = np.arange(A)
    perm = (2 * (c % B) + c // B) % B                       # static numpy indices
    eff_labels = labels.astype(jnp.int32)[perm].reshape(1, A)

    kernel = functools.partial(
        _supcon_kernel,
        temperature=float(temperature),
        base_temperature=float(base_temperature),
        sampled_frame_idx=int(sampled_frame_idx),
        memory_is_normalized=bool(memory_is_normalized))

    loss = pl.pallas_call(
        kernel,
        out_shape=jax.ShapeDtypeStruct((1, 1), jnp.float32),
        in_specs=[
            pl.BlockSpec(memory_space=pltpu.MemorySpace.VMEM),   # feature1 [B, L]
            pl.BlockSpec(memory_space=pl.ANY),                   # feature2 [B, F, L] (HBM)
            pl.BlockSpec(memory_space=pltpu.MemorySpace.VMEM),   # memory rows [M, L]
            pl.BlockSpec(memory_space=pltpu.MemorySpace.VMEM),   # labels [1, 2B]
        ],
        out_specs=pl.BlockSpec(memory_space=pltpu.MemorySpace.SMEM),
        scratch_shapes=[
            pltpu.VMEM((B, 1, L), jnp.float32),                  # sampled frame buffer
            pltpu.SemaphoreType.DMA(()),
        ],
    )(feature1.astype(jnp.float32), feature2.astype(jnp.float32),
      memory_features.astype(jnp.float32), eff_labels)

    return loss[0, 0]


def _reference_loss(feature1, feature2, labels, memory_features, *,
                    temperature=1.0, base_temperature=1.0, sampled_frame_idx=0):
    """Pure-JAX transcription of the torch forward (for the self-check)."""
    B, L = feature1.shape
    sampled = feature2[:, sampled_frame_idx, :]
    features = jnp.stack([feature1, sampled], axis=1).reshape(B * 2, L)
    contrast = jnp.concatenate([features, memory_features], axis=0)
    lab = jnp.tile(labels.reshape(-1, 1), (2, 1))
    mask = (lab == lab.T).astype(jnp.float32)
    mask = jnp.concatenate(
        [mask, jnp.zeros((B * 2, memory_features.shape[0]), jnp.float32)], axis=1)
    f_n = features / jnp.maximum(
        jnp.sqrt(jnp.sum(features * features, axis=1, keepdims=True)), 1e-12)
    c_n = contrast / jnp.maximum(
        jnp.sqrt(jnp.sum(contrast * contrast, axis=1, keepdims=True)), 1e-12)
    logits = jnp.matmul(f_n, c_n.T, precision=lax.Precision.HIGHEST) / temperature
    logits = logits - jnp.max(logits, axis=1, keepdims=True)
    exp_l = jnp.maximum(jnp.exp(logits), 1e-12)
    log_prob = logits - jnp.log(jnp.sum(exp_l, axis=1, keepdims=True))
    pos = jnp.maximum(jnp.sum(mask, axis=1), 1.0)
    mlpp = jnp.sum(mask * log_prob, axis=1) / pos
    return jnp.mean(-(temperature / base_temperature) * mlpp)


def update_memory_bank(bank, ptr, features):
    """Functional MemoryBank.update: stores L2-normalized rows (as torch does,
    since `features` is F.normalize'd before the update), with wrap-around."""
    feats_n = features * jnp.minimum(
        lax.rsqrt(jnp.sum(features * features, axis=1, keepdims=True)), 1e12)
    n = features.shape[0]
    idx = (ptr + jnp.arange(n)) % bank.shape[0]
    new_bank = bank.at[idx].set(feats_n)
    new_ptr = (ptr + n) % bank.shape[0]
    return new_bank, new_ptr


if __name__ == "__main__":
    B = 8            # batch_size
    NUM_FRAME = 4
    L = 128          # feature length
    MEMORY_SIZE = 64

    key = jax.random.PRNGKey(0)
    k1, k2, k3 = jax.random.split(key, 3)

    feature1 = jax.random.normal(k1, (B, L), dtype=jnp.float32)
    feature2 = jax.random.normal(k2, (B, NUM_FRAME, L), dtype=jnp.float32)
    labels = jax.random.randint(k3, (B,), 0, 3, dtype=jnp.int32)

    # --- step 1: fresh (all-zero) memory bank, like the torch module's 1st call ---
    bank = jnp.zeros((MEMORY_SIZE, L), dtype=jnp.float32)
    mem0 = bank[:B]                       # deterministic stand-in for random.sample
    loss0 = supcon_loss_with_memory_bank(
        feature1, feature2, labels, mem0,
        temperature=1.0, base_temperature=1.0, sampled_frame_idx=0)
    loss0 = jax.block_until_ready(loss0)
    ref0 = jax.block_until_ready(_reference_loss(
        feature1, feature2, labels, mem0,
        temperature=1.0, base_temperature=1.0, sampled_frame_idx=0))
    np.testing.assert_allclose(float(loss0), float(ref0), rtol=1e-4, atol=1e-5)

    # --- step 2: bank update with the normalized anchors (memory_bank.update) ---
    sampled = feature2[:, 0, :]
    feats = jnp.stack([feature1, sampled], axis=1).reshape(B * 2, L)
    bank, ptr = update_memory_bank(bank, 0, feats)
    jax.block_until_ready(bank)

    # --- step 3: non-trivial (unit-norm) memory rows, different frame & temps,
    # exercising the skipped memory normalization and the temperature fold ---
    mem1 = bank[:B]
    loss1 = supcon_loss_with_memory_bank(
        feature1, feature2, labels, mem1,
        temperature=0.5, base_temperature=1.0, sampled_frame_idx=1,
        memory_is_normalized=True)
    loss1 = jax.block_until_ready(loss1)
    ref1 = jax.block_until_ready(_reference_loss(
        feature1, feature2, labels, mem1,
        temperature=0.5, base_temperature=1.0, sampled_frame_idx=1))
    np.testing.assert_allclose(float(loss1), float(ref1), rtol=1e-4, atol=1e-5)

    print("KERNEL_OK")
</pallas_src>

<mosaic_0001>
module attributes {stable_mosaic.version = 11 : i64} {
  func.func @_supcon_kernel(%arg0: memref<8x128xf32, #tpu.memory_space<vmem>>, %arg1: memref<8x4x128xf32, #tpu.memory_space<any>>, %arg2: memref<8x128xf32, #tpu.memory_space<vmem>>, %arg3: memref<1x16xi32, #tpu.memory_space<vmem>>, %arg4: memref<1x1xf32, #tpu.memory_space<smem>>, %arg5: memref<8x1x128xf32, #tpu.memory_space<vmem>>, %arg6: memref<!tpu.dma_semaphore, #tpu.memory_space<semaphore_mem>>) attributes {dimension_semantics = [], scalar_prefetch = 0 : i64, scratch_operands = 2 : i64, tpu.core_type = #tpu.core_type<tc>} {
    %c0_i32 = arith.constant 0 : i32
    %c0_i32_0 = arith.constant 0 : i32
    %c0_i32_1 = arith.constant 0 : i32
    %0 = tpu.memref_slice %arg1[%c0_i32, %c0_i32_0, %c0_i32_1] : memref<8x4x128xf32, #tpu.memory_space<any>> -> memref<8x1x128xf32, #tpu.memory_space<any>>
    tpu.enqueue_dma source(%0 : memref<8x1x128xf32, #tpu.memory_space<any>>) target(%arg5 : memref<8x1x128xf32, #tpu.memory_space<vmem>>) target_semaphore(%arg6 : memref<!tpu.dma_semaphore, #tpu.memory_space<semaphore_mem>>)
    %c0 = arith.constant 0 : index
    %c0_2 = arith.constant 0 : index
    %1 = vector.load %arg0[%c0, %c0_2] : memref<8x128xf32, #tpu.memory_space<vmem>>, vector<8x128xf32>
    %2 = arith.mulf %1, %1 : vector<8x128xf32>
    %cst = arith.constant dense<0.000000e+00> : vector<8xf32>
    %3 = vector.multi_reduction <add>, %2, %cst [1] : vector<8x128xf32> to vector<8xf32>
    %4 = vector.shape_cast %3 : vector<8xf32> to vector<8x1xf32>
    %5 = math.rsqrt %4 : vector<8x1xf32>
    %cst_3 = arith.constant 9.99999995E+11 : f32
    %6 = vector.broadcast %cst_3 : f32 to vector<8x1xf32>
    %7 = arith.minimumf %5, %6 : vector<8x1xf32>
    %8 = vector.broadcast %7 : vector<8x1xf32> to vector<8x128xf32>
    %9 = arith.mulf %1, %8 : vector<8x128xf32>
    %c0_4 = arith.constant 0 : index
    %c0_5 = arith.constant 0 : index
    %10 = vector.load %arg2[%c0_4, %c0_5] : memref<8x128xf32, #tpu.memory_space<vmem>>, vector<8x128xf32>
    %c0_6 = arith.constant 0 : index
    %c0_7 = arith.constant 0 : index
    %11 = vector.load %arg3[%c0_6, %c0_7] : memref<1x16xi32, #tpu.memory_space<vmem>>, vector<1x16xi32>
    %12 = tpu.transpose %11, [1, 0] : vector<1x16xi32> -> vector<16x1xi32>
    %13 = vector.broadcast %12 : vector<16x1xi32> to vector<16x16xi32>
    %14 = vector.broadcast %11 : vector<1x16xi32> to vector<16x16xi32>
    %15 = arith.cmpi eq, %13, %14 : vector<16x16xi32>
    %16 = arith.extui %15 : vector<16x16xi1> to vector<16x16xi32>
    %17 = arith.sitofp %16 : vector<16x16xi32> to vector<16x16xf32>
    %c0_i32_8 = arith.constant 0 : i32
    %c0_i32_9 = arith.constant 0 : i32
    %c0_i32_10 = arith.constant 0 : i32
    %18 = tpu.memref_slice %arg1[%c0_i32_8, %c0_i32_9, %c0_i32_10] : memref<8x4x128xf32, #tpu.memory_space<any>> -> memref<8x1x128xf32, #tpu.memory_space<any>>
    tpu.wait_dma2 semaphore(%arg6 : memref<!tpu.dma_semaphore, #tpu.memory_space<semaphore_mem>>) src(%18 : memref<8x1x128xf32, #tpu.memory_space<any>>) dst(%arg5 : memref<8x1x128xf32, #tpu.memory_space<vmem>>)
    %c0_11 = arith.constant 0 : index
    %c0_12 = arith.constant 0 : index
    %c0_13 = arith.constant 0 : index
    %19 = vector.load %arg5[%c0_11, %c0_12, %c0_13] : memref<8x1x128xf32, #tpu.memory_space<vmem>>, vector<8x1x128xf32>
    %20 = vector.shape_cast %19 : vector<8x1x128xf32> to vector<8x128xf32>
    %21 = arith.mulf %20, %20 : vector<8x128xf32>
    %cst_14 = arith.constant dense<0.000000e+00> : vector<8xf32>
    %22 = vector.multi_reduction <add>, %21, %cst_14 [1] : vector<8x128xf32> to vector<8xf32>
    %23 = vector.shape_cast %22 : vector<8xf32> to vector<8x1xf32>
    %24 = math.rsqrt %23 : vector<8x1xf32>
    %cst_15 = arith.constant 9.99999995E+11 : f32
    %25 = vector.broadcast %cst_15 : f32 to vector<8x1xf32>
    %26 = arith.minimumf %24, %25 : vector<8x1xf32>
    %27 = vector.broadcast %26 : vector<8x1xf32> to vector<8x128xf32>
    %28 = arith.mulf %20, %27 : vector<8x128xf32>
    %29 = tpu.concatenate %9, %28 in 0 : vector<8x128xf32>, vector<8x128xf32> -> vector<16x128xf32>
    %cst_16 = arith.constant dense<0.000000e+00> : vector<16x16xf32>
    %30 = tpu.matmul %29, %29, %cst_16 {dimension_numbers = #tpu.dot_dimension_numbers<[1], [1], [0], [0], [0, 0, 1, 0], [], []>} : vector<16x128xf32>, vector<16x128xf32>, vector<16x16xf32> -> vector<16x16xf32>
    %cst_17 = arith.constant dense<0.000000e+00> : vector<16x8xf32>
    %31 = tpu.matmul %29, %10, %cst_17 {dimension_numbers = #tpu.dot_dimension_numbers<[1], [1], [0], [0], [0, 0, 1, 0], [], []>} : vector<16x128xf32>, vector<8x128xf32>, vector<16x8xf32> -> vector<16x8xf32>
    %cst_18 = arith.constant dense<0xFF800000> : vector<16xf32>
    %32 = vector.multi_reduction <maximumf>, %30, %cst_18 [1] : vector<16x16xf32> to vector<16xf32>
    %33 = vector.shape_cast %32 : vector<16xf32> to vector<16x1xf32>
    %cst_19 = arith.constant dense<0xFF800000> : vector<16xf32>
    %34 = vector.multi_reduction <maximumf>, %31, %cst_19 [1] : vector<16x8xf32> to vector<16xf32>
    %35 = vector.shape_cast %34 : vector<16xf32> to vector<16x1xf32>
    %36 = arith.maximumf %33, %35 : vector<16x1xf32>
    %37 = vector.broadcast %36 : vector<16x1xf32> to vector<16x16xf32>
    %38 = arith.subf %30, %37 : vector<16x16xf32>
    %39 = math.exp %38 : vector<16x16xf32>
    %cst_20 = arith.constant 9.99999996E-13 : f32
    %40 = vector.broadcast %cst_20 : f32 to vector<16x16xf32>
    %41 = arith.maximumf %39, %40 : vector<16x16xf32>
    %42 = vector.broadcast %36 : vector<16x1xf32> to vector<16x8xf32>
    %43 = arith.subf %31, %42 : vector<16x8xf32>
    %44 = math.exp %43 : vector<16x8xf32>
    %cst_21 = arith.constant 9.99999996E-13 : f32
    %45 = vector.broadcast %cst_21 : f32 to vector<16x8xf32>
    %46 = arith.maximumf %44, %45 : vector<16x8xf32>
    %cst_22 = arith.constant dense<0.000000e+00> : vector<16xf32>
    %47 = vector.multi_reduction <add>, %41, %cst_22 [1] : vector<16x16xf32> to vector<16xf32>
    %48 = vector.shape_cast %47 : vector<16xf32> to vector<16x1xf32>
    %cst_23 = arith.constant dense<0.000000e+00> : vector<16xf32>
    %49 = vector.multi_reduction <add>, %46, %cst_23 [1] : vector<16x8xf32> to vector<16xf32>
    %50 = vector.shape_cast %49 : vector<16xf32> to vector<16x1xf32>
    %51 = arith.addf %48, %50 : vector<16x1xf32>
    %52 = math.log %51 : vector<16x1xf32>
    %53 = vector.broadcast %36 : vector<16x1xf32> to vector<16x16xf32>
    %54 = arith.subf %30, %53 : vector<16x16xf32>
    %55 = vector.broadcast %52 : vector<16x1xf32> to vector<16x16xf32>
    %56 = arith.subf %54, %55 : vector<16x16xf32>
    %cst_24 = arith.constant dense<0.000000e+00> : vector<16xf32>
    %57 = vector.multi_reduction <add>, %17, %cst_24 [1] : vector<16x16xf32> to vector<16xf32>
    %58 = vector.shape_cast %57 : vector<16xf32> to vector<16x1xf32>
    %cst_25 = arith.constant 1.000000e+00 : f32
    %59 = vector.broadcast %cst_25 : f32 to vector<16x1xf32>
    %60 = arith.maximumf %58, %59 : vector<16x1xf32>
    %61 = arith.mulf %17, %56 : vector<16x16xf32>
    %cst_26 = arith.constant dense<0.000000e+00> : vector<16xf32>
    %62 = vector.multi_reduction <add>, %61, %cst_26 [1] : vector<16x16xf32> to vector<16xf32>
    %63 = vector.shape_cast %62 : vector<16xf32> to vector<16x1xf32>
    %64 = arith.divf %63, %60 : vector<16x1xf32>
    %65 = vector.shape_cast %64 : vector<16x1xf32> to vector<1x16x1xf32>
    %cst_27 = arith.constant dense<0.000000e+00> : vector<1xf32>
    %66 = vector.multi_reduction <add>, %65, %cst_27 [1, 2] : vector<1x16x1xf32> to vector<1xf32>
    %67 = vector.shape_cast %66 : vector<1xf32> to vector<1x1x1xf32>
    %68 = vector.extract %67[0, 0, 0] : f32 from vector<1x1x1xf32>
    %cst_28 = arith.constant -6.250000e-02 : f32
    %69 = arith.mulf %68, %cst_28 : f32
    %c0_29 = arith.constant 0 : index
    %c0_30 = arith.constant 0 : index
    %70 = memref.load %arg4[%c0_29, %c0_30] : memref<1x1xf32, #tpu.memory_space<smem>>
    memref.store %69, %arg4[%c0_29, %c0_30] : memref<1x1xf32, #tpu.memory_space<smem>>
    return
  }
}

</mosaic_0001>

<bundles_post_ra>
// kernel: tpu_custom_call.1
= control target key start
LH: loop header
LB: loop body
LE: loop exit
PB: predicated region body
PF: predicated region fallthrough
CT: control target
= control target key end

     0   :  { %9 = vsyncpa [#allocation5], 0  ;;  %s819_s0 = inlined_call_operand.hbm [shape: f32[8,128], index: 0, kind: input, shape index: {}]   ;;  %s820_s1 = inlined_call_operand.hbm [shape: f32[8,4,128], index: 1, kind: input, shape index: {}]   ;;  %s821_s2 = inlined_call_operand.hbm [shape: f32[8,128], index: 2, kind: input, shape index: {}]   ;;  %s822_s3 = inlined_call_operand.vmem [shape: s32[1,16], index: 3, kind: input, shape index: {}]   ;;  %s823_s4 = inlined_call_operand.hbm [shape: f32[1,1], index: 4, kind: output, shape index: {}]  }
   0x1   :  { %10 = vsyncpa [#allocation8], 0 }
   0x2   :  { %11 = vsyncpa [#allocation6], 0  ;;  %s694_s15 = smov [#allocation4]   ;;  %s695_s17 = smov [#allocation7]  }
   0x3   :  { %s18_s16 = sshll.u32 %s694_s15, 4  ;;  %s28_s18 = sshll.u32 %s695_s17, 4  ;;  %s19_s16 = int_to_ptr.vmem [resolvable:$true] %s18_s16  ;;  %s29_s18 = int_to_ptr.vmem [resolvable:$true] %s28_s18 }
   0x4   :  { %s610_s21 = scalar_lea.hbm %s819_s0, 128 }
   0x5   :  { %p611_p0 = scmp.ne.s32.totalorder %s819_s0, %s610_s21  ;;  %p614_p1 = scmp.lt.u32.totalorder %s610_s21, %s819_s0 }
   0x7   :  { %p616_p2 = pnand %p614_p1, %p611_p0 }
   0x9   :  { %619 = shalt.err (!%p616_p2)
}
   0xa   :  { %s620_s26 = scalar_lea.vmem %s19_s16, 128  ;;  %p625_p4 = scmp.lt.s32.totalorder %s19_s16, %s19_s16 }
   0xb   :  { %p621_p3 = scmp.ne.s32.totalorder %s19_s16, %s620_s26  ;;  %p626_p5 = scmp.lt.s32.totalorder %s620_s26, %s620_s26 }
   0xd   :  { %p627_p6 = por %p626_p5, %p625_p4 }
   0xf   :  { %p628_p7 = pnand %p627_p6, %p621_p3 }
  0x11   :  { %631 = shalt.err (!%p628_p7)
}
  0x12   :  { %21 = dma.hbm_to_vmem [thread:$0]  %s819_s0, 128, %s19_s16, [#allocation5]  }
  0x13   :  { %s632_s5 = scalar_lea.hbm %s821_s2, 128 }
  0x14   :  { %p633_p8 = scmp.ne.s32.totalorder %s821_s2, %s632_s5  ;;  %p636_p9 = scmp.lt.u32.totalorder %s632_s5, %s821_s2 }
  0x16   :  { %p638_p10 = pnand %p636_p9, %p633_p8 }
  0x18   :  { %641 = shalt.err (!%p638_p10)
}
  0x19   :  { %s642_s10 = scalar_lea.vmem %s29_s18, 128  ;;  %p647_p12 = scmp.lt.s32.totalorder %s29_s18, %s29_s18 }
  0x1a   :  { %p643_p11 = scmp.ne.s32.totalorder %s29_s18, %s642_s10  ;;  %p648_p13 = scmp.lt.s32.totalorder %s642_s10, %s642_s10 }
  0x1c   :  { %p649_p0 = por %p648_p13, %p647_p12 }
  0x1e   :  { %p650_p1 = pnand %p649_p0, %p643_p11 }
  0x20   :  { %653 = shalt.err (!%p650_p1)
}
  0x21   :  { %31 = dma.hbm_to_vmem [thread:$0]  %s821_s2, 128, %s29_s18, [#allocation8]  }
  0x22   :  { %686 = dma.done.wait [#allocation5], 128  }
  0x23   :  { %687 = vsyncadd [#allocation5], 4294967168 }
  0x24   :  { %688 = dma.done.wait [#allocation8], 128  }
  0x25   :  { %689 = vsyncadd [#allocation8], 4294967168  ;;  %v696_v0 = vmov 0   ;;  %v52_v1 = vld [vmem:[#allocation7] sm:$0xff]  ;;  %v53_v2 = vld [vmem:[%s822_s3] sm:$0x1] }
  0x26   :  { %588 = vset.pattern.permute.xlu1 %v696_v0  ;;  %54 = vxpose.xlu0.b32.start.end [1/1] (short) (narrow) %v53_v2, 16  ;;  %v45_v3 = vld [vmem:[#allocation4] sm:$0xff]  ;;  %s697_s2 = smov [#allocation2]   ;;  %s654_s17 = scalar_lea.hbm %s820_s1, 128 }
  0x27   :  { %v46_v4 = vmul.f32 %v45_v3, %v45_v3  ;;  %s41_s14 = sshll.u32 %s697_s2, 4  ;;  %p655_p2 = scmp.ne.s32.totalorder %s820_s1, %s654_s17  ;;  %s42_s14 = int_to_ptr.vmem [resolvable:$true] %s41_s14 }
  0x28   :  { %s656_s21 = scalar_lea.hbm %s820_s1, 512  ;;  %p658_p4 = scmp.lt.u32.totalorder %s654_s17, %s820_s1 }
  0x29   :  { %p657_p3 = scmp.lt.u32.totalorder %s656_s21, %s654_s17 }
  0x2b   :  { %p659_p5 = por %p658_p4, %p657_p3 }
  0x2d   :  { %p660_p6 = pnand %p659_p5, %p655_p2 }
  0x4f   :  { %589 = vset.pattern.permute.xlu0 %v696_v0 }
  0x57   :  { %47 = vadd.xlane.f32.xlu0 %v46_v4 }
  0xa6   :  { %v70_v5 = vpop.trf.xlu0 }
  0xa7   :  { %87 = vperm.xlu1 %588, %v70_v5  }
  0xaa   :  { %v71_v6 = vpop.trf.xlu0 }
  0xab   :  { %90 = vperm.xlu1 %588, %v71_v6  }
  0xac   :  { %663 = shalt.err (!%p660_p6)  }
  0xad   :  { %s664_s24 = scalar_lea.vmem %s42_s14, 128  ;;  %p669_p8 = scmp.lt.s32.totalorder %s42_s14, %s42_s14 }
  0xae   :  { %p665_p7 = scmp.ne.s32.totalorder %s42_s14, %s664_s24  ;;  %p670_p9 = scmp.lt.s32.totalorder %s664_s24, %s664_s24 }
  0xb0   :  { %p671_p10 = por %p670_p9, %p669_p8 }
  0xb2   :  { %p672_p11 = pnand %p671_p10, %p665_p7 }
  0xb4   :  { %675 = shalt.err (!%p672_p11)  }
  0xb5   :  { %s698_s25 = smov 64   ;;  %s699_s26 = smov 16   ;;  %v92_v11 = vlaneseq  ;;  %v701_v16 = vmov 0.0  }
  0xb6   :  { %s700_s27 = smov 1  }
  0xb7   :  { %44 = dma.hbm_to_vmem [thread:$0]  %s820_s1, 128, %s42_s14, [#allocation3], %s698_s25, %s699_s26, %s700_s27  ;;  %v773_v12 = vshrl.u32 %v92_v11, 7 }
  0xb9   :  { %v94_v13 = vsub.s32 0, %v773_v12 }
  0xbb   :  { %v95_v14 = vrot.slane %v53_v2, %v94_v13 }
  0xe4   :  { %v48_v7 = vpop.xlane.xlu0 %47 }
  0xe5   :  { %590 = vrsqrt.f32 %v48_v7 }
  0xef   :  { %v591_v8 = vpop.eup %590 }
  0xf0   :  { %v50_v9 = vmin.f32 %v591_v8, 1e+12 }
  0xf2   :  { %v771_v10 = vmul.f32 %v50_v9, %v45_v3 }
 0x126   :  { %v88_v15 = vpop.permute.xlu1 %87 }
 0x127   :  { %vm96_vm0 = vcmp.eq.s32.totalorder %v88_v15, %v95_v14 }
 0x128   :  { %v776_v17 = vsel %vm96_vm0, 1.0, %v701_v16 }
 0x12a   :  { %v91_v18 = vpop.permute.xlu1 %90 }
 0x12b   :  { %vm97_vm1 = vcmp.eq.s32.totalorder %v91_v18, %v95_v14 }
 0x12c   :  { %v778_v19 = vsel %vm97_vm1, 1.0, %v701_v16 }
 0x12d   :  { %690 = dma.done.wait [#allocation3], 128 }
 0x12e   :  { %691 = vsyncadd [#allocation3], 4294967168  ;;  %567 = vmatprep.subr.mxu1 %v52_v1  ;;  %569 = vmatprep.mubr.f32.mxu1 %v771_v10  ;;  %v702_v20 = vmov 1966171168   ;;  %v106_v23 = vld [vmem:[#allocation2] sm:$0x1] }
 0x12f   :  { %v135_v21 = vunpack.c.l.s4 %v702_v20  ;;  %568 = vmatpush3.xpose.msra.mxu1 %v52_v1  ;;  %564 = vmatprep.mubr.f32.mxu0 %v771_v10  ;;  %v107_v24 = vld [vmem:[#allocation2 + $0x1] sm:$0x1]  ;;  %v108_v25 = vld [vmem:[#allocation2 + $0x2] sm:$0x1]  ;;  %v109_v26 = vld [vmem:[#allocation2 + $0x3] sm:$0x1]  ;;  %v114_v29 = vmul.f32 %v106_v23, %v106_v23 }
 0x130   :  { %v110_v27 = vld [vmem:[#allocation2 + $0x4] sm:$0x1]  ;;  %v111_v28 = vld [vmem:[#allocation2 + $0x5] sm:$0x1]  ;;  %v115_v30 = vmul.f32 %v107_v24, %v107_v24  ;;  %v116_v31 = vmul.f32 %v108_v25, %v108_v25  ;;  %v112_v33 = vld [vmem:[#allocation2 + $0x6] sm:$0x1]  ;;  %v117_v35 = vmul.f32 %v109_v26, %v109_v26 }
 0x131   :  { %v136_v22 = vunpack.c.0.s8 %v135_v21  ;;  %v113_v34 = vld [vmem:[#allocation2 + $0x7] sm:$0x1]  ;;  %v118_v36 = vmul.f32 %v110_v27, %v110_v27  ;;  %v119_v37 = vmul.f32 %v111_v28, %v111_v28  ;;  %v120_v38 = vmul.f32 %v112_v33, %v112_v33  ;;  %s676_s7 = scalar_lea.hbm %s823_s4, 16 }
 0x132   :  { %v121_v39 = vmul.f32 %v113_v34, %v113_v34  ;;  %v130_v40 = vcombine.low %v114_v29, %v115_v30  ;;  %v131_v41 = vcombine.low %v116_v31, %v117_v35  ;;  %v191_v54 = vsub.s32 1, %v773_v12  ;;  %p677_p12 = scmp.ne.s32.totalorder %s823_s4, %s676_s7  ;;  %p680_p13 = scmp.lt.u32.totalorder %s676_s7, %s823_s4 }
 0x133   :  { %v139_v32 = vsub.s32 %v136_v22, %v773_v12  ;;  %v132_v42 = vcombine.low %v118_v36, %v119_v37  ;;  %v195_v55 = vsub.s32 2, %v773_v12  ;;  %v199_v56 = vsub.s32 3, %v773_v12 }
 0x134   :  { %v133_v43 = vcombine.low %v120_v38, %v121_v39  ;;  %v203_v58 = vsub.s32 4, %v773_v12  ;;  %v207_v59 = vsub.s32 5, %v773_v12  ;;  %v211_v60 = vsub.s32 6, %v773_v12  ;;  %p682_p0 = pnand %p680_p13, %p677_p12 }
 0x135   :  { %v140_v44 = vrot.slane %v130_v40, %v139_v32  ;;  %v147_v45 = vrot.slane %v131_v41, %v139_v32  ;;  %v154_v46 = vrot.slane %v132_v42, %v139_v32  ;;  %v215_v61 = vsub.s32 7, %v773_v12 }
 0x136   :  { %v161_v47 = vrot.slane %v133_v43, %v139_v32  ;;  %vm441_vm2 = vcmask 130048   ;;  %vm448_vm3 = vcmask 64512   ;;  %vm513_vm4 = vcmask 7168  }
 0x137   :  { %v162_v48 = vcombine.low %v140_v44, %v147_v45 }
 0x138   :  { %v163_v49 = vcombine.low %v154_v46, %v161_v47 }
 0x139   :  { %v170_v50 = vrot.slane %v162_v48, %v139_v32 }
 0x13a   :  { %v177_v51 = vrot.slane %v163_v49, %v139_v32 }
 0x13c   :  { %v178_v52 = vcombine.low %v170_v50, %v177_v51 }
 0x13e   :  { %180 = vadd.xlane.f32.xlu0 %v178_v52 }
 0x1cb   :  { %v181_v53 = vpop.xlane.xlu0 %180 }
 0x1cc   :  { %592 = vrsqrt.f32 %v181_v53 }
 0x1d6   :  { %v593_v57 = vpop.eup %592 }
 0x1d7   :  { %v183_v62 = vmin.f32 %v593_v57, 1e+12 }
 0x1d9   :  { %v188_v63 = vrot.slane %v183_v62, %v94_v13  ;;  %v192_v0 = vrot.slane %v183_v62, %v191_v54  ;;  %v196_v1 = vrot.slane %v183_v62, %v195_v55  ;;  %v200_v2 = vrot.slane %v183_v62, %v199_v56 }
 0x1da   :  { %v204_v3 = vrot.slane %v183_v62, %v203_v58  ;;  %v208_v4 = vrot.slane %v183_v62, %v207_v59  ;;  %v212_v5 = vrot.slane %v183_v62, %v211_v60  ;;  %v216_v6 = vrot.slane %v183_v62, %v215_v61 }
 0x1db   :  { %v225_v7 = vmul.f32 %v188_v63, %v106_v23  ;;  %v226_v8 = vmul.f32 %v192_v0, %v107_v24  ;;  %v227_v9 = vmul.f32 %v196_v1, %v108_v25  ;;  %v228_v11 = vmul.f32 %v200_v2, %v109_v26 }
 0x1dc   :  { %v229_v14 = vmul.f32 %v204_v3, %v110_v27  ;;  %v230_v15 = vmul.f32 %v208_v4, %v111_v28  ;;  %v231_v16 = vmul.f32 %v212_v5, %v112_v33  ;;  %v232_v18 = vmul.f32 %v216_v6, %v113_v34 }
 0x1dd   :  { %v241_v20 = vcombine.low %v225_v7, %v226_v8  ;;  %v242_v21 = vcombine.low %v227_v9, %v228_v11  ;;  %v493_v1 = vsel %vm441_vm2, %v776_v17, 0.0  ;;  %v496_v2 = vsel %vm441_vm2, %v778_v19, 0.0 }
 0x1de   :  { %v243_v12 = vcombine.low %v229_v14, %v230_v15  ;;  %v244_v22 = vcombine.low %v231_v16, %v232_v18 }
 0x1df   :  { %v251_v13 = vrot.slane %v241_v20, %v139_v32  ;;  %v258_v29 = vrot.slane %v242_v21, %v139_v32 }
 0x1e0   :  { %v265_v30 = vrot.slane %v243_v12, %v139_v32  ;;  %v272_v31 = vrot.slane %v244_v22, %v139_v32 }
 0x1e1   :  { %v273_v35 = vcombine.low %v251_v13, %v258_v29 }
 0x1e2   :  { %v274_v36 = vcombine.low %v265_v30, %v272_v31 }
 0x1e3   :  { %v281_v37 = vrot.slane %v273_v35, %v139_v32 }
 0x1e4   :  { %v288_v38 = vrot.slane %v274_v36, %v139_v32 }
 0x1e6   :  { %v289_v23 = vcombine.low %v281_v37, %v288_v38 }
 0x1e8   :  { %570 = vmatmul.mubr.f32.vlgmr.msra.gmra.mrb[0].mxu1 %v289_v23  ;;  %v572_v24 = vpack.c.bf16 %v289_v23, %v771_v10 }
 0x1ea   :  { %573 = vmatprep.subr.bf16.mxu0 %v572_v24 }
 0x1eb   :  { %575 = vmatpush3.bf16.xpose.msra.mxu0 %v572_v24 }
 0x1f2   :  { %565 = vmatmul.mubr.f32.vlgmr.msra.gmra.mrb[0].mxu0 %v289_v23 }
 0x2bb   :  { %v571_v25 = vpop.f32.mrb[0].mxu1 }
 0x2bc   :  { %v432_v26 = vpop.f32.mrb[1].mxu1  ;;  %v452_v10 = vsel %vm448_vm3, %v571_v25, -inf }
 0x2bd   :  { %v449_v32 = vsel %vm448_vm3, %v432_v26, -inf }
 0x2c5   :  { %v566_v27 = vpop.f32.mrb[0].mxu0 }
 0x2c6   :  { %v357_v28 = vpop.f32.mrb[1].mxu0  ;;  %v445_v33 = vsel %vm441_vm2, %v566_v27, -inf }
 0x2c7   :  { %446 = vmax.xlane.f32.xlu1 %v445_v33  ;;  %v442_v34 = vsel %vm441_vm2, %v357_v28, -inf }
 0x2c8   :  { %443 = vmax.xlane.f32.xlu0 %v442_v34 }
 0x2cb   :  { %450 = vmax.xlane.f32.xlu1 %v449_v32 }
 0x2cc   :  { %453 = vmax.xlane.f32.xlu0 %v452_v10 }
 0x354   :  { %v447_v39 = vpop.xlane.xlu1 %446 }
 0x355   :  { %v444_v40 = vpop.xlane.xlu0 %443 }
 0x358   :  { %v451_v41 = vpop.xlane.xlu1 %450 }
 0x359   :  { %v455_v42 = vmax.f32 %v444_v40, %v451_v41  ;;  %v454_v43 = vpop.xlane.xlu0 %453 }
 0x35a   :  { %v456_v44 = vmax.f32 %v447_v39, %v454_v43 }
 0x35b   :  { %v457_v45 = vsub.f32 %v357_v28, %v455_v42  ;;  %v465_v46 = vsub.f32 %v432_v26, %v455_v42 }
 0x35c   :  { %v458_v47 = vsub.f32 %v566_v27, %v456_v44  ;;  %v466_v48 = vsub.f32 %v571_v25, %v456_v44 }
 0x35d   :  { %v459_v49 = vmul.f32 1.442695, %v457_v45  ;;  %v467_v50 = vmul.f32 1.442695, %v465_v46 }
 0x35e   :  { %v461_v51 = vmul.f32 1.442695, %v458_v47  ;;  %v469_v52 = vmul.f32 1.442695, %v466_v48 }
 0x35f   :  { %594 = vpow2.f32 %v459_v49 }
 0x360   :  { %596 = vpow2.f32 %v467_v50 }
 0x361   :  { %598 = vpow2.f32 %v461_v51 }
 0x362   :  { %600 = vpow2.f32 %v469_v52 }
 0x369   :  { %v595_v53 = vpop.eup %594 }
 0x36a   :  { %v597_v54 = vpop.eup %596  ;;  %v463_v55 = vmax.f32 %v595_v53, 1e-12 }
 0x36b   :  { %v599_v56 = vpop.eup %598  ;;  %v471_v60 = vmax.f32 %v597_v54, 1e-12 }
 0x36c   :  { %v601_v57 = vpop.eup %600  ;;  %v473_v58 = vsel %vm441_vm2, %v463_v55, 0.0  ;;  %v464_v59 = vmax.f32 %v599_v56, 1e-12 }
 0x36d   :  { %474 = vadd.xlane.f32.xlu1 %v473_v58  ;;  %v472_v62 = vmax.f32 %v601_v57, 1e-12  ;;  %v479_v63 = vsel %vm448_vm3, %v471_v60, 0.0 }
 0x36e   :  { %v476_v61 = vsel %vm441_vm2, %v464_v59, 0.0 }
 0x36f   :  { %477 = vadd.xlane.f32.xlu0 %v476_v61  ;;  %v482_v0 = vsel %vm448_vm3, %v472_v62, 0.0 }
 0x371   :  { %480 = vadd.xlane.f32.xlu1 %v479_v63 }
 0x373   :  { %483 = vadd.xlane.f32.xlu0 %v482_v0 }
 0x375   :  { %494 = vadd.xlane.f32.xlu1 %v493_v1 }
 0x377   :  { %497 = vadd.xlane.f32.xlu0 %v496_v2 }
 0x3fa   :  { %v475_v3 = vpop.xlane.xlu1 %474 }
 0x3fc   :  { %v478_v4 = vpop.xlane.xlu0 %477 }
 0x3fe   :  { %v481_v5 = vpop.xlane.xlu1 %480 }
 0x3ff   :  { %v485_v6 = vadd.f32 %v481_v5, %v475_v3 }
 0x400   :  { %v484_v7 = vpop.xlane.xlu0 %483 }
 0x401   :  { %602 = vlog2.f32 %v485_v6  ;;  %v486_v8 = vadd.f32 %v484_v7, %v478_v4 }
 0x402   :  { %v495_v13 = vpop.xlane.xlu1 %494 }
 0x403   :  { %604 = vlog2.f32 %v486_v8  ;;  %v499_v30 = vmax.f32 %v495_v13, 1.0 }
 0x404   :  { %v498_v29 = vpop.xlane.xlu0 %497 }
 0x405   :  { %v500_v31 = vmax.f32 %v498_v29, 1.0  ;;  %606 = vrcp.f32 %v499_v30 }
 0x407   :  { %608 = vrcp.f32 %v500_v31 }
 0x40b   :  { %v603_v9 = vpop.eup %602 }
 0x40c   :  { %v488_v11 = vmul.f32 0.6931472, %v603_v9 }
 0x40d   :  { %v605_v14 = vpop.eup %604 }
 0x40e   :  { %v490_v15 = vmul.f32 0.6931472, %v605_v14  ;;  %v491_v16 = vsub.f32 %v457_v45, %v488_v11 }
 0x40f   :  { %v607_v35 = vpop.eup %606 }
 0x410   :  { %v501_v18 = vmul.f32 %v776_v17, %v491_v16  ;;  %v492_v20 = vsub.f32 %v458_v47, %v490_v15 }
 0x411   :  { %v609_v36 = vpop.eup %608 }
 0x412   :  { %v503_v21 = vsel %vm441_vm2, %v501_v18, 0.0  ;;  %v502_v12 = vmul.f32 %v778_v19, %v492_v20 }
 0x413   :  { %504 = vadd.xlane.f32.xlu1 %v503_v21 }
 0x414   :  { %v506_v22 = vsel %vm441_vm2, %v502_v12, 0.0 }
 0x415   :  { %507 = vadd.xlane.f32.xlu0 %v506_v22 }
 0x4a0   :  { %v505_v37 = vpop.xlane.xlu1 %504 }
 0x4a1   :  { %v510_v17 = vmul.f32 %v607_v35, %v505_v37 }
 0x4a2   :  { %v508_v38 = vpop.xlane.xlu0 %507 }
 0x4a3   :  { %v512_v23 = vmul.f32 %v609_v36, %v508_v38  ;;  %v514_v24 = vsel %vm513_vm4, %v510_v17, 0.0 }
 0x4a5   :  { %v515_v25 = vsel %vm513_vm4, %v512_v23, 0.0 }
 0x4a6   :  { %v516_v19 = vadd.f32 %v515_v25, %v514_v24 }
 0x4a8   :  { %517 = vadd.xlane.f32.xlu1 %v516_v19 }
 0x535   :  { %v518_v26 = vpop.xlane.xlu1 %517 }
 0x536   :  { %v519_v27 = vrot.slane %v518_v26, 4 }
 0x538   :  { %v520_v28 = vadd.f32 %v519_v27, %v518_v26 }
 0x53a   :  { %v521_v33 = vrot.slane %v520_v28, 2 }
 0x53c   :  { %v522_v34 = vadd.f32 %v521_v33, %v520_v28 }
 0x53e   :  { %v523_v32 = vrot.slane %v522_v34, 1 }
 0x540   :  { %v524_v10 = vadd.f32 %v523_v32, %v522_v34 }
 0x542   :  { %576 = vpush %v524_v10 }
 0x573   :  { %s577_s1 = spop %576 }
 0x574   :  { %s526_s30 = smul.f32 -0.0625, %s577_s1 }
 0x576   :  { %528 = sst [smem:[#allocation9]] %s526_s30 }
 0x577   :  { %685 = shalt.err (!%p682_p0)
}
 0x578   :  { %s703_s11 = smov [#allocation9]  }
 0x579   :  { %536 = dma.smem_to_hbm %s703_s11, 16, %s823_s4, [#allocation6]  }
 0x57a   :  { %692 = dma.done.wait [#allocation6], 16  }
 0x57b   :  { %693 = vsyncadd [#allocation6], 4294967280 }
 0x57c   :  { %540 = sfence }
 0x57d   :  { %541 = vsyncpa [#allocation5], 1 }
 0x57e   :  { %542 = vsyncpa [#allocation8], 1 }
 0x57f   :  { %543 = vsyncpa [#allocation6], 1 }
 0x580   :  { %544 = vsyncmov [#allocation3] }
 0x583   :  { %s545_s2 = vpop.sfrf %544 }
 0x584   :  { %p552_p1 = scmp.ne.s32.totalorder %s545_s2, 0 }
 0x586   :  { %549 = shalt.err (%p552_p1)  }

</bundles_post_ra>
